<compile_context>
chip_gen: v7x
topology: tpu7x:2x2x1
jax: 0.10.0
libtpu: 0.0.40
codegen_flags: <defaults>
</compile_context>

<pallas_src>
import functools

import jax
import jax.numpy as jnp
from jax import lax
from jax.experimental import pallas as pl
from jax.experimental.pallas import tpu as pltpu


def _se_conv_bn_relu_kernel(x_ref, m_ref, b_ref, w1_ref, b1_ref, w2_ref, b2_ref,
                            o_ref, *, ks, H, W, nf):
    # One grid step == one image.
    #   x_ref:  (1, H+2p, (W+2p)*Cin)  raw zero-padded NHWC rows, bf16
    #   m_ref:  (ks, (W+2p)*Cin, W*nf) block-banded BN-folded conv weights, bf16
    #   b_ref:  (1, W*nf)              folded BN shift, tiled over W, f32
    #   w1/b1:  SE reduce FC ; w2/b2:  SE expand FC (f32, tiny)
    #   o_ref:  (1, H, W*nf)           conv_x * (1 + sigmoid(SE))
    Wnf = W * nf
    ximg = x_ref[0]                                              # (Hp, Jp) bf16

    # Conv + folded BN + ReLU: ks row-shifted bf16 matmuls, f32 accumulation.
    acc = jnp.zeros((H, Wnf), jnp.float32)
    for dy in range(ks):                                         # static, ks==3
        acc = acc + jnp.dot(ximg[dy:dy + H, :], m_ref[dy],
                            preferred_element_type=jnp.float32)
    y = jnp.maximum(acc + b_ref[...], 0.0)                       # (H, W*nf) f32

    # Squeeze: per-channel mean over H (sublane reduce) and W (one-hot matmul).
    colsum = jnp.sum(y, axis=0, keepdims=True)                   # (1, W*nf)
    lane_ch = lax.broadcasted_iota(jnp.int32, (Wnf, nf), 0) % nf
    ch = lax.broadcasted_iota(jnp.int32, (Wnf, nf), 1)
    pool_map = (lane_ch == ch).astype(jnp.float32)               # (W*nf, nf)
    pooled = jnp.dot(colsum, pool_map,
                     preferred_element_type=jnp.float32) * (1.0 / (H * W))

    # Excitation: FC -> ReLU -> FC -> sigmoid (all f32, tiny).
    z = jnp.maximum(jnp.dot(pooled, w1_ref[...],
                            preferred_element_type=jnp.float32) + b1_ref[...], 0.0)
    t = jnp.dot(z, w2_ref[...],
                preferred_element_type=jnp.float32) + b2_ref[...]
    g = 1.0 / (1.0 + jnp.exp(-t))                                # (1, nf)

    # Broadcast gate back to the (W*nf) lane layout: lane q gets g[q % nf].
    ch2 = lax.broadcasted_iota(jnp.int32, (nf, Wnf), 0)
    lane_ch2 = lax.broadcasted_iota(jnp.int32, (nf, Wnf), 1) % nf
    bcast_map = (ch2 == lane_ch2).astype(jnp.float32)            # (nf, W*nf)
    g_full = jnp.dot(g, bcast_map, preferred_element_type=jnp.float32)

    # forward = conv_x + conv_x * se(conv_x) == conv_x * (1 + gate).
    o_ref[0] = (y * (1.0 + g_full)).astype(o_ref.dtype)


def se_conv_bn_relu(x, params, *, ks=3, eps=1e-5):
    """Forward of SEConvBNReLU (stride=1, SAME padding), fused in one Pallas kernel.

    x: (B, C_in, H, W) float32 (NCHW, as in PyTorch).  Returns (B, nf, H, W) float32.
    """
    w_conv = params["conv_w"]                    # (nf, ni, ks, ks)
    gamma, beta = params["bn_gamma"], params["bn_beta"]
    mean, var = params["bn_mean"], params["bn_var"]
    w1, b1 = params["se_w1"], params["se_b1"]    # (hid, nf), (hid,)
    w2, b2 = params["se_w2"], params["se_b2"]    # (nf, hid), (nf,)

    B, Cin, H, W = x.shape
    nf = w_conv.shape[0]
    hid = w1.shape[0]
    p = ks // 2
    Hp, Wp = H + 2 * p, W + 2 * p
    Jp = Wp * Cin            # lanes of one padded input row
    Q = W * nf               # lanes of one output row (lane-dense, no channel pad)

    # ---- trace-time preprocessing (weights only; tiny) ----------------------
    # Fold inference-mode BN into the conv weight / bias.
    scale = gamma * lax.rsqrt(var + eps)                          # (nf,)
    wf = jnp.transpose(w_conv, (2, 3, 1, 0)) * scale[None, None, None, :]  # (ks,ks,Cin,nf)
    b_col = beta - mean * scale                                   # (nf,)
    b_full = jnp.tile(b_col, W).reshape(1, Q).astype(jnp.float32)

    # Block-banded conv matrix per row-tap dy:
    #   M[dy, j, w*nf + f] = wf[dy, dx, c, f]  where j = (w+dx)*Cin + c, else 0.
    j = jnp.arange(Jp)
    q = jnp.arange(Q)
    w_of_q = q // nf
    f_of_q = q % nf
    rel = j[:, None] - w_of_q[None, :] * Cin                      # (Jp, Q)
    valid = (rel >= 0) & (rel < ks * Cin)
    rel_cl = jnp.clip(rel, 0, ks * Cin - 1)
    dx_of, c_of = rel_cl // Cin, rel_cl % Cin
    M = jnp.stack(
        [jnp.where(valid, wf[dy][dx_of, c_of, f_of_q[None, :]], 0.0)
         for dy in range(ks)], axis=0).astype(jnp.bfloat16)       # (ks, Jp, Q)

    # Raw input, spatially zero-padded, rows flattened channels-last, bf16.
    # (The NCHW<->NHWC transposes only exist to honour the PyTorch interface; a
    #  channels-last caller could feed / consume this layout directly.)
    x_nhwc = jnp.transpose(x, (0, 2, 3, 1))
    xp = jnp.pad(x_nhwc, ((0, 0), (p, p), (p, p), (0, 0)))
    x_rows = xp.reshape(B, Hp, Jp).astype(jnp.bfloat16)           # (B, Hp, Jp)

    # SE weights stay f32 (tiny, resident; epilogue precision).
    w1m = jnp.transpose(w1).astype(jnp.float32)                   # (nf, hid)
    b1m = b1.reshape(1, hid).astype(jnp.float32)
    w2m = jnp.transpose(w2).astype(jnp.float32)                   # (hid, nf)
    b2m = b2.reshape(1, nf).astype(jnp.float32)

    cost = pl.CostEstimate(
        flops=int(2 * B * H * W * ks * ks * Cin * nf + 4 * B * nf * hid),
        transcendentals=int(B * nf),
        bytes_accessed=int(x_rows.size * 2 + M.size * 2 + b_full.size * 4
                           + w1m.size * 4 + b1m.size * 4 + w2m.size * 4
                           + b2m.size * 4 + B * H * Q * 4),
    )

    kernel = functools.partial(_se_conv_bn_relu_kernel, ks=ks, H=H, W=W, nf=nf)

    out = pl.pallas_call(
        kernel,
        out_shape=jax.ShapeDtypeStruct((B, H, Q), jnp.float32),
        grid_spec=pltpu.PrefetchScalarGridSpec(
            num_scalar_prefetch=0,
            grid=(B,),                                            # one image per step
            in_specs=[
                pl.BlockSpec((1, Hp, Jp), lambda b: (b, 0, 0)),   # padded image rows
                pl.BlockSpec((ks, Jp, Q), lambda b: (0, 0, 0)),   # banded conv weight
                pl.BlockSpec((1, Q), lambda b: (0, 0)),           # folded BN bias
                pl.BlockSpec((nf, hid), lambda b: (0, 0)),        # SE reduce W
                pl.BlockSpec((1, hid), lambda b: (0, 0)),         # SE reduce b
                pl.BlockSpec((hid, nf), lambda b: (0, 0)),        # SE expand W
                pl.BlockSpec((1, nf), lambda b: (0, 0)),          # SE expand b
            ],
            out_specs=pl.BlockSpec((1, H, Q), lambda b: (b, 0, 0)),
        ),
        compiler_params=pltpu.CompilerParams(
            dimension_semantics=("parallel",),    # images shard across TCs on v7x
        ),
        cost_estimate=cost,
    )(x_rows, M, b_full, w1m, b1m, w2m, b2m)

    # (B, H, W*nf) -> (B, nf, H, W); no channel padding to strip.
    out = out.reshape(B, H, W, nf)
    return jnp.transpose(out, (0, 3, 1, 2))


if __name__ == "__main__":
    key = jax.random.PRNGKey(0)
    ks_ = jax.random.split(key, 10)

    B, Cin, H, W = 2, 4, 16, 16
    nf, reduction, ksz = 16, 8, 3
    hid = nf // reduction
    eps = 1e-5

    x = jax.random.normal(ks_[0], (B, Cin, H, W), jnp.float32)

    fan_in = Cin * ksz * ksz
    params = dict(
        conv_w=jax.random.normal(ks_[1], (nf, Cin, ksz, ksz), jnp.float32)
        * (2.0 / fan_in) ** 0.5,
        bn_gamma=jax.random.uniform(ks_[2], (nf,), jnp.float32, 0.5, 1.5),
        bn_beta=0.1 * jax.random.normal(ks_[3], (nf,), jnp.float32),
        bn_mean=0.1 * jax.random.normal(ks_[4], (nf,), jnp.float32),
        bn_var=jax.random.uniform(ks_[5], (nf,), jnp.float32, 0.5, 1.5),
        se_w1=jax.random.normal(ks_[6], (hid, nf), jnp.float32) * (1.0 / nf) ** 0.5,
        se_b1=jax.random.uniform(ks_[7], (hid,), jnp.float32, -0.1, 0.1),
        se_w2=jax.random.normal(ks_[8], (nf, hid), jnp.float32) * (1.0 / hid) ** 0.5,
        se_b2=jax.random.uniform(ks_[9], (nf,), jnp.float32, -0.1, 0.1),
    )

    fwd = jax.jit(functools.partial(se_conv_bn_relu, ks=ksz, eps=eps))
    y = fwd(x, params)
    jax.block_until_ready(y)

    # ---- pure-JAX reference (same bf16 rounding of the MXU operands) --------
    scale = params["bn_gamma"] * lax.rsqrt(params["bn_var"] + eps)
    wf = params["conv_w"] * scale[:, None, None, None]
    wf_b = wf.astype(jnp.bfloat16).astype(jnp.float32)
    x_b = x.astype(jnp.bfloat16).astype(jnp.float32)
    b_shift = params["bn_beta"] - params["bn_mean"] * scale
    conv = lax.conv_general_dilated(
        x_b, wf_b, window_strides=(1, 1), padding="SAME",
        dimension_numbers=("NCHW", "OIHW", "NCHW"))
    conv_x = jnp.maximum(conv + b_shift[None, :, None, None], 0.0)
    pooled = jnp.mean(conv_x, axis=(2, 3))                          # (B, nf)
    z = jnp.maximum(pooled @ params["se_w1"].T + params["se_b1"], 0.0)
    t = z @ params["se_w2"].T + params["se_b2"]
    gate = 1.0 / (1.0 + jnp.exp(-t))
    y_ref = conv_x + conv_x * gate[:, :, None, None]

    assert y.shape == y_ref.shape == (B, nf, H, W)
    max_err = float(jnp.max(jnp.abs(y - y_ref)))
    assert jnp.allclose(y, y_ref, atol=1e-4, rtol=1e-4), f"max_err={max_err}"

    print("KERNEL_OK")
</pallas_src>

<mosaic_0001>
module attributes {stable_mosaic.version = 11 : i64} {
  func.func @_se_conv_bn_relu_kernel(%arg0: i32, %arg1: memref<1x18x72xbf16, #tpu.memory_space<vmem>>, %arg2: memref<3x72x256xbf16, #tpu.memory_space<vmem>>, %arg3: memref<1x256xf32, #tpu.memory_space<vmem>>, %arg4: memref<16x2xf32, #tpu.memory_space<vmem>>, %arg5: memref<1x2xf32, #tpu.memory_space<vmem>>, %arg6: memref<2x16xf32, #tpu.memory_space<vmem>>, %arg7: memref<1x16xf32, #tpu.memory_space<vmem>>, %arg8: memref<1x16x256xf32, #tpu.memory_space<vmem>>) attributes {dimension_semantics = [#tpu.dimension_semantics<parallel>], iteration_bounds = array<i64: 2>, scalar_prefetch = 0 : i64, scratch_operands = 0 : i64, tpu.core_type = #tpu.core_type<tc>, window_params = [{transform_indices = @transform_0, window_bounds = array<i64: 1, 18, 72>}, {pipeline_mode = #tpu.pipeline_mode<synchronous>, transform_indices = @transform_1, window_bounds = array<i64: 3, 72, 256>}, {pipeline_mode = #tpu.pipeline_mode<synchronous>, transform_indices = @transform_2, window_bounds = array<i64: 1, 256>}, {pipeline_mode = #tpu.pipeline_mode<synchronous>, transform_indices = @transform_3, window_bounds = array<i64: 16, 2>}, {pipeline_mode = #tpu.pipeline_mode<synchronous>, transform_indices = @transform_4, window_bounds = array<i64: 1, 2>}, {pipeline_mode = #tpu.pipeline_mode<synchronous>, transform_indices = @transform_5, window_bounds = array<i64: 2, 16>}, {pipeline_mode = #tpu.pipeline_mode<synchronous>, transform_indices = @transform_6, window_bounds = array<i64: 1, 16>}, {transform_indices = @transform_7, window_bounds = array<i64: 1, 16, 256>}]} {
    %c0 = arith.constant 0 : index
    %c0_0 = arith.constant 0 : index
    %c0_1 = arith.constant 0 : index
    %0 = vector.load %arg1[%c0, %c0_0, %c0_1] : memref<1x18x72xbf16, #tpu.memory_space<vmem>>, vector<1x18x72xbf16>
    %1 = vector.shape_cast %0 : vector<1x18x72xbf16> to vector<18x72xbf16>
    %cst = arith.constant 0.000000e+00 : f32
    %2 = vector.broadcast %cst : f32 to vector<16x256xf32>
    %3 = vector.extract_strided_slice %1 {offsets = [0, 0], sizes = [16, 72], strides = [1, 1]} : vector<18x72xbf16> to vector<16x72xbf16>
    %c0_2 = arith.constant 0 : index
    %c0_3 = arith.constant 0 : index
    %c0_4 = arith.constant 0 : index
    %4 = vector.load %arg2[%c0_2, %c0_3, %c0_4] : memref<3x72x256xbf16, #tpu.memory_space<vmem>>, vector<1x72x256xbf16>
    %5 = vector.shape_cast %4 : vector<1x72x256xbf16> to vector<72x256xbf16>
    %cst_5 = arith.constant dense<0.000000e+00> : vector<16x256xf32>
    %6 = tpu.matmul %3, %5, %cst_5 {dimension_numbers = #tpu.dot_dimension_numbers<[1], [0], [0], [1], [0, 0, 1, 1], [], []>} : vector<16x72xbf16>, vector<72x256xbf16>, vector<16x256xf32> -> vector<16x256xf32>
    %7 = arith.addf %2, %6 : vector<16x256xf32>
    %8 = vector.extract_strided_slice %1 {offsets = [1, 0], sizes = [16, 72], strides = [1, 1]} : vector<18x72xbf16> to vector<16x72xbf16>
    %c1 = arith.constant 1 : index
    %c0_6 = arith.constant 0 : index
    %c0_7 = arith.constant 0 : index
    %9 = vector.load %arg2[%c1, %c0_6, %c0_7] : memref<3x72x256xbf16, #tpu.memory_space<vmem>>, vector<1x72x256xbf16>
    %10 = vector.shape_cast %9 : vector<1x72x256xbf16> to vector<72x256xbf16>
    %cst_8 = arith.constant dense<0.000000e+00> : vector<16x256xf32>
    %11 = tpu.matmul %8, %10, %cst_8 {dimension_numbers = #tpu.dot_dimension_numbers<[1], [0], [0], [1], [0, 0, 1, 1], [], []>} : vector<16x72xbf16>, vector<72x256xbf16>, vector<16x256xf32> -> vector<16x256xf32>
    %12 = arith.addf %7, %11 : vector<16x256xf32>
    %13 = vector.extract_strided_slice %1 {offsets = [2, 0], sizes = [16, 72], strides = [1, 1]} : vector<18x72xbf16> to vector<16x72xbf16>
    %c2 = arith.constant 2 : index
    %c0_9 = arith.constant 0 : index
    %c0_10 = arith.constant 0 : index
    %14 = vector.load %arg2[%c2, %c0_9, %c0_10] : memref<3x72x256xbf16, #tpu.memory_space<vmem>>, vector<1x72x256xbf16>
    %15 = vector.shape_cast %14 : vector<1x72x256xbf16> to vector<72x256xbf16>
    %cst_11 = arith.constant dense<0.000000e+00> : vector<16x256xf32>
    %16 = tpu.matmul %13, %15, %cst_11 {dimension_numbers = #tpu.dot_dimension_numbers<[1], [0], [0], [1], [0, 0, 1, 1], [], []>} : vector<16x72xbf16>, vector<72x256xbf16>, vector<16x256xf32> -> vector<16x256xf32>
    %17 = arith.addf %12, %16 : vector<16x256xf32>
    %c0_12 = arith.constant 0 : index
    %c0_13 = arith.constant 0 : index
    %18 = vector.load %arg3[%c0_12, %c0_13] : memref<1x256xf32, #tpu.memory_space<vmem>>, vector<1x256xf32>
    %19 = vector.broadcast %18 : vector<1x256xf32> to vector<16x256xf32>
    %20 = arith.addf %17, %19 : vector<16x256xf32>
    %cst_14 = arith.constant 0.000000e+00 : f32
    %21 = vector.broadcast %cst_14 : f32 to vector<16x256xf32>
    %22 = arith.maximumf %20, %21 : vector<16x256xf32>
    %cst_15 = arith.constant dense<0.000000e+00> : vector<256xf32>
    %23 = vector.multi_reduction <add>, %22, %cst_15 [0] : vector<16x256xf32> to vector<256xf32>
    %24 = vector.shape_cast %23 : vector<256xf32> to vector<1x256xf32>
    %25 = tpu.iota {dimensions = array<i32: 0>} : vector<256x16xi32>
    %c16_i32 = arith.constant 16 : i32
    %c0_i32 = arith.constant 0 : i32
    %26 = arith.cmpi eq, %c16_i32, %c0_i32 : i32
    %c1_i32 = arith.constant 1 : i32
    %27 = arith.select %26, %c1_i32, %c16_i32 : i32
    %28 = vector.broadcast %27 : i32 to vector<256x16xi32>
    %29 = arith.remsi %25, %28 : vector<256x16xi32>
    %c0_i32_16 = arith.constant 0 : i32
    %30 = vector.broadcast %c0_i32_16 : i32 to vector<256x16xi32>
    %31 = arith.cmpi ne, %29, %30 : vector<256x16xi32>
    %c0_i32_17 = arith.constant 0 : i32
    %32 = vector.broadcast %c0_i32_17 : i32 to vector<256x16xi32>
    %33 = arith.cmpi slt, %29, %32 : vector<256x16xi32>
    %c0_i32_18 = arith.constant 0 : i32
    %34 = arith.cmpi slt, %27, %c0_i32_18 : i32
    %35 = vector.broadcast %34 : i1 to vector<256x16xi1>
    %36 = vector.broadcast %35 : vector<256x16xi1> to vector<256x16xi1>
    %37 = arith.xori %33, %36 : vector<256x16xi1>
    %38 = arith.andi %37, %31 : vector<256x16xi1>
    %39 = vector.broadcast %27 : i32 to vector<256x16xi32>
    %40 = arith.addi %29, %39 : vector<256x16xi32>
    %41 = arith.select %38, %40, %29 : vector<256x16xi1>, vector<256x16xi32>
    %42 = tpu.iota {dimensions = array<i32: 1>} : vector<256x16xi32>
    %43 = arith.cmpi eq, %41, %42 : vector<256x16xi32>
    %44 = arith.extui %43 : vector<256x16xi1> to vector<256x16xi32>
    %45 = arith.sitofp %44 : vector<256x16xi32> to vector<256x16xf32>
    %cst_19 = arith.constant dense<0.000000e+00> : vector<1x16xf32>
    %46 = tpu.matmul %24, %45, %cst_19 {dimension_numbers = #tpu.dot_dimension_numbers<[1], [0], [0], [1], [0, 0, 1, 1], [], []>} : vector<1x256xf32>, vector<256x16xf32>, vector<1x16xf32> -> vector<1x16xf32>
    %cst_20 = arith.constant 3.906250e-03 : f32
    %47 = vector.broadcast %cst_20 : f32 to vector<1x16xf32>
    %48 = arith.mulf %46, %47 : vector<1x16xf32>
    %c0_21 = arith.constant 0 : index
    %c0_22 = arith.constant 0 : index
    %49 = vector.load %arg4[%c0_21, %c0_22] : memref<16x2xf32, #tpu.memory_space<vmem>>, vector<16x2xf32>
    %cst_23 = arith.constant dense<0.000000e+00> : vector<1x2xf32>
    %50 = tpu.matmul %48, %49, %cst_23 {dimension_numbers = #tpu.dot_dimension_numbers<[1], [0], [0], [1], [0, 0, 1, 1], [], []>} : vector<1x16xf32>, vector<16x2xf32>, vector<1x2xf32> -> vector<1x2xf32>
    %c0_24 = arith.constant 0 : index
    %c0_25 = arith.constant 0 : index
    %51 = vector.load %arg5[%c0_24, %c0_25] : memref<1x2xf32, #tpu.memory_space<vmem>>, vector<1x2xf32>
    %52 = arith.addf %50, %51 : vector<1x2xf32>
    %cst_26 = arith.constant 0.000000e+00 : f32
    %53 = vector.broadcast %cst_26 : f32 to vector<1x2xf32>
    %54 = arith.maximumf %52, %53 : vector<1x2xf32>
    %c0_27 = arith.constant 0 : index
    %c0_28 = arith.constant 0 : index
    %55 = vector.load %arg6[%c0_27, %c0_28] : memref<2x16xf32, #tpu.memory_space<vmem>>, vector<2x16xf32>
    %cst_29 = arith.constant dense<0.000000e+00> : vector<1x16xf32>
    %56 = tpu.matmul %54, %55, %cst_29 {dimension_numbers = #tpu.dot_dimension_numbers<[1], [0], [0], [1], [0, 0, 1, 1], [], []>} : vector<1x2xf32>, vector<2x16xf32>, vector<1x16xf32> -> vector<1x16xf32>
    %c0_30 = arith.constant 0 : index
    %c0_31 = arith.constant 0 : index
    %57 = vector.load %arg7[%c0_30, %c0_31] : memref<1x16xf32, #tpu.memory_space<vmem>>, vector<1x16xf32>
    %58 = arith.addf %56, %57 : vector<1x16xf32>
    %cst_32 = arith.constant 0.000000e+00 : f32
    %59 = vector.broadcast %cst_32 : f32 to vector<1x16xf32>
    %60 = arith.subf %59, %58 : vector<1x16xf32>
    %61 = math.exp %60 : vector<1x16xf32>
    %cst_33 = arith.constant 1.000000e+00 : f32
    %62 = vector.broadcast %cst_33 : f32 to vector<1x16xf32>
    %63 = arith.addf %62, %61 : vector<1x16xf32>
    %cst_34 = arith.constant 1.000000e+00 : f32
    %64 = vector.broadcast %cst_34 : f32 to vector<1x16xf32>
    %65 = arith.divf %64, %63 : vector<1x16xf32>
    %66 = tpu.iota {dimensions = array<i32: 0>} : vector<16x256xi32>
    %67 = tpu.iota {dimensions = array<i32: 1>} : vector<16x256xi32>
    %c16_i32_35 = arith.constant 16 : i32
    %c0_i32_36 = arith.constant 0 : i32
    %68 = arith.cmpi eq, %c16_i32_35, %c0_i32_36 : i32
    %c1_i32_37 = arith.constant 1 : i32
    %69 = arith.select %68, %c1_i32_37, %c16_i32_35 : i32
    %70 = vector.broadcast %69 : i32 to vector<16x256xi32>
    %71 = arith.remsi %67, %70 : vector<16x256xi32>
    %c0_i32_38 = arith.constant 0 : i32
    %72 = vector.broadcast %c0_i32_38 : i32 to vector<16x256xi32>
    %73 = arith.cmpi ne, %71, %72 : vector<16x256xi32>
    %c0_i32_39 = arith.constant 0 : i32
    %74 = vector.broadcast %c0_i32_39 : i32 to vector<16x256xi32>
    %75 = arith.cmpi slt, %71, %74 : vector<16x256xi32>
    %c0_i32_40 = arith.constant 0 : i32
    %76 = arith.cmpi slt, %69, %c0_i32_40 : i32
    %77 = vector.broadcast %76 : i1 to vector<16x256xi1>
    %78 = vector.broadcast %77 : vector<16x256xi1> to vector<16x256xi1>
    %79 = arith.xori %75, %78 : vector<16x256xi1>
    %80 = arith.andi %79, %73 : vector<16x256xi1>
    %81 = vector.broadcast %69 : i32 to vector<16x256xi32>
    %82 = arith.addi %71, %81 : vector<16x256xi32>
    %83 = arith.select %80, %82, %71 : vector<16x256xi1>, vector<16x256xi32>
    %84 = arith.cmpi eq, %66, %83 : vector<16x256xi32>
    %85 = arith.extui %84 : vector<16x256xi1> to vector<16x256xi32>
    %86 = arith.sitofp %85 : vector<16x256xi32> to vector<16x256xf32>
    %cst_41 = arith.constant dense<0.000000e+00> : vector<1x256xf32>
    %87 = tpu.matmul %65, %86, %cst_41 {dimension_numbers = #tpu.dot_dimension_numbers<[1], [0], [0], [1], [0, 0, 1, 1], [], []>} : vector<1x16xf32>, vector<16x256xf32>, vector<1x256xf32> -> vector<1x256xf32>
    %cst_42 = arith.constant 1.000000e+00 : f32
    %88 = vector.broadcast %cst_42 : f32 to vector<1x256xf32>
    %89 = arith.addf %88, %87 : vector<1x256xf32>
    %90 = vector.broadcast %89 : vector<1x256xf32> to vector<16x256xf32>
    %91 = arith.mulf %22, %90 : vector<16x256xf32>
    %c0_43 = arith.constant 0 : index
    %c0_44 = arith.constant 0 : index
    %c0_45 = arith.constant 0 : index
    %92 = vector.load %arg8[%c0_43, %c0_44, %c0_45] : memref<1x16x256xf32, #tpu.memory_space<vmem>>, vector<1x16x256xf32>
    %93 = vector.shape_cast %92 : vector<1x16x256xf32> to vector<16x256xf32>
    %94 = vector.shape_cast %91 : vector<16x256xf32> to vector<1x16x256xf32>
    tpu.vector_store %arg8[%c0_43, %c0_44, %c0_45], %94 {strides = array<i32>} : memref<1x16x256xf32, #tpu.memory_space<vmem>>, vector<1x16x256xf32>,
    return
  }
  func.func @transform_0(%arg0: i32) -> (i32, i32, i32) {
    %c0_i32 = arith.constant 0 : i32
    %c0_i32_0 = arith.constant 0 : i32
    %c0_i32_1 = arith.constant 0 : i32
    return %arg0, %c0_i32, %c0_i32_0 : i32, i32, i32
  }
  func.func @transform_1(%arg0: i32) -> (i32, i32, i32) {
    %c0_i32 = arith.constant 0 : i32
    %c0_i32_0 = arith.constant 0 : i32
    %c0_i32_1 = arith.constant 0 : i32
    %c0_i32_2 = arith.constant 0 : i32
    return %c0_i32, %c0_i32_0, %c0_i32_1 : i32, i32, i32
  }
  func.func @transform_2(%arg0: i32) -> (i32, i32) {
    %c0_i32 = arith.constant 0 : i32
    %c0_i32_0 = arith.constant 0 : i32
    %c0_i32_1 = arith.constant 0 : i32
    return %c0_i32, %c0_i32_0 : i32, i32
  }
  func.func @transform_3(%arg0: i32) -> (i32, i32) {
    %c0_i32 = arith.constant 0 : i32
    %c0_i32_0 = arith.constant 0 : i32
    %c0_i32_1 = arith.constant 0 : i32
    return %c0_i32, %c0_i32_0 : i32, i32
  }
  func.func @transform_4(%arg0: i32) -> (i32, i32) {
    %c0_i32 = arith.constant 0 : i32
    %c0_i32_0 = arith.constant 0 : i32
    %c0_i32_1 = arith.constant 0 : i32
    return %c0_i32, %c0_i32_0 : i32, i32
  }
  func.func @transform_5(%arg0: i32) -> (i32, i32) {
    %c0_i32 = arith.constant 0 : i32
    %c0_i32_0 = arith.constant 0 : i32
    %c0_i32_1 = arith.constant 0 : i32
    return %c0_i32, %c0_i32_0 : i32, i32
  }
  func.func @transform_6(%arg0: i32) -> (i32, i32) {
    %c0_i32 = arith.constant 0 : i32
    %c0_i32_0 = arith.constant 0 : i32
    %c0_i32_1 = arith.constant 0 : i32
    return %c0_i32, %c0_i32_0 : i32, i32
  }
  func.func @transform_7(%arg0: i32) -> (i32, i32, i32) {
    %c0_i32 = arith.constant 0 : i32
    %c0_i32_0 = arith.constant 0 : i32
    %c0_i32_1 = arith.constant 0 : i32
    return %arg0, %c0_i32, %c0_i32_0 : i32, i32, i32
  }
}

</mosaic_0001>

<bundles_post_ra>
// kernel: tile.8
= control target key start
LH: loop header
LB: loop body
LE: loop exit
PB: predicated region body
PF: predicated region fallthrough
CT: control target
= control target key end

     0   :  { %s28_s0 = inlined_call_operand.vmem [shape: f32[16], index: 0, kind: input, shape index: {}]   ;;  %s29_s1 = inlined_call_operand.vmem [shape: f32[16,16], index: 1, kind: output, shape index: {}]  }
   0x1   :  { %v4_v0 = vld [vmem:[%s28_s0] ss:$0 sm:$0xff] }
   0x2   :  { %5 = vst [vmem:[%s29_s1] sm:$0xff] %v4_v0  ;;  %8 = vst [vmem:[%s29_s1 + $0x8] sm:$0xff] %v4_v0 }

// kernel: tile.9
= control target key start
LH: loop header
LB: loop body
LE: loop exit
PB: predicated region body
PF: predicated region fallthrough
CT: control target
= control target key end

     0   :  { %s7_s6 = smov 3  ;;  %s21_s9 = smov 3  ;;  %vm4_vm0 = vcmask 130048   ;;  %vm11_vm1 = vcmask 1048448   ;;  %vm18_vm2 = vcmask 917248   ;;  %vm25_vm3 = vcmask 786048   ;;  %s128_s0 = inlined_call_operand.vmem [shape: f32[16,16], index: 0, kind: input, shape index: {}]   ;;  %s129_s1 = inlined_call_operand.vmem [shape: f32[1,256], index: 1, kind: output, shape index: {}]  }
   0x1   :  { %v66_v0 = vld [vmem:[%s128_s0 + $0x7] ss:$8 sm:%s7_s6]   ;;  %s81_s10 = smov 112   ;;  %v68_v1 = vld [vmem:[%s128_s0 + $0x5] ss:$8 sm:%s21_s9]   ;;  %s14_s13 = smov 3 }
   0x2   :  { %9 = vrot.lane.b32.xlu0 %v66_v0, %s81_s10  ;;  %s82_s14 = smov 80   ;;  %v67_v2 = vld [vmem:[%s128_s0 + $0x6] ss:$8 sm:%s14_s13]   ;;  %s28_s17 = smov 3  ;;  %vm32_vm4 = vcmask 654848   ;;  %vm39_vm5 = vcmask 523648  }
   0x3   :  { %23 = vrot.lane.b32.xlu1 %v68_v1, %s82_s14  ;;  %v69_v3 = vld [vmem:[%s128_s0 + $0x4] ss:$8 sm:%s28_s17]   ;;  %s35_s20 = smov 3  ;;  %s42_s21 = smov 3  ;;  %vm46_vm6 = vcmask 392448   ;;  %vm53_vm7 = vcmask 261248  }
   0x4   :  { %s83_s22 = smov 96   ;;  %s84_s23 = smov 64   ;;  %v70_v4 = vld [vmem:[%s128_s0 + $0x3] ss:$8 sm:%s35_s20]   ;;  %v71_v5 = vld [vmem:[%s128_s0 + $0x2] ss:$8 sm:%s42_s21]  }
   0x5   :  { %s2_s26 = smov 3  ;;  %s49_s29 = smov 3 }
   0x6   :  { %16 = vrot.lane.b32.xlu0 %v67_v2, %s83_s22  ;;  %v3_v6 = vld [vmem:[%s128_s0] ss:$8 sm:%s2_s26]   ;;  %s85_s3 = smov 48   ;;  %s86_s4 = smov 32  }
   0x7   :  { %30 = vrot.lane.b32.xlu1 %v69_v3, %s84_s23  ;;  %5 = vst.msk [vmem:[#allocation0] ss:$8 sm:$0x3] %vm4_vm0, %v3_v6   ;;  %v72_v7 = vld [vmem:[%s128_s0 + $0x1] ss:$8 sm:%s49_s29]   ;;  %s87_s0 = smov 16  }
   0xa   :  { %37 = vrot.lane.b32.xlu0 %v70_v4, %s85_s3 }
   0xb   :  { %44 = vrot.lane.b32.xlu1 %v71_v5, %s86_s4 }
   0xe   :  { %51 = vrot.lane.b32.xlu0 %v72_v7, %s87_s0 }
  0x74   :  { %v10_v8 = vpop.permute.xlu0 %9  }
  0x75   :  { %12 = vst.msk [vmem:[#allocation0] ss:$8 sm:$0x3] %vm11_vm1, %v10_v8   ;;  %v24_v9 = vpop.permute.xlu1 %23  }
  0x78   :  { %v17_v10 = vpop.permute.xlu0 %16  }
  0x79   :  { %19 = vst.msk [vmem:[#allocation0] ss:$8 sm:$0x3] %vm18_vm2, %v17_v10   ;;  %v31_v11 = vpop.permute.xlu1 %30  }
  0x7a   :  { %26 = vst.msk [vmem:[#allocation0] ss:$8 sm:$0x3] %vm25_vm3, %v24_v9  }
  0x7b   :  { %33 = vst.msk [vmem:[#allocation0] ss:$8 sm:$0x3] %vm32_vm4, %v31_v11  }
  0x7c   :  { %v38_v12 = vpop.permute.xlu0 %37  }
  0x7d   :  { %40 = vst.msk [vmem:[#allocation0] ss:$8 sm:$0x3] %vm39_vm5, %v38_v12   ;;  %v45_v13 = vpop.permute.xlu1 %44  }
  0x7e   :  { %47 = vst.msk [vmem:[#allocation0] ss:$8 sm:$0x3] %vm46_vm6, %v45_v13  }
  0x80   :  { %v52_v14 = vpop.permute.xlu0 %51  }
  0x81   :  { %54 = vst.msk [vmem:[#allocation0] ss:$8 sm:$0x3] %vm53_vm7, %v52_v14  }
  0x88   :  { %v58_v15 = vld [vmem:[#allocation0] sm:$0x1]  ;;  %v62_v16 = vld [vmem:[#allocation0 + $0x8] sm:$0x1] }
  0x89   :  { %60 = vst [vmem:[%s129_s1] sm:$0x1] %v58_v15  ;;  %73 = vst [vmem:[%s129_s1 + $0x1] sm:$0x1] %v62_v16 }

// kernel: se_conv_bn_relu.1
= control target key start
LH: loop header
LB: loop body
LE: loop exit
PB: predicated region body
PF: predicated region fallthrough
CT: control target
= control target key end

     0   :  { %s1956_s24 = smov 0   ;;  %s2254_s0 = inlined_call_operand.vmem [shape: bf16[2,18,72], index: 0, kind: input, shape index: {}]   ;;  %s2255_s1 = inlined_call_operand.vmem [shape: bf16[3,72,256], index: 1, kind: input, shape index: {}]   ;;  %s2256_s2 = inlined_call_operand.vmem [shape: f32[1,256], index: 2, kind: input, shape index: {}]   ;;  %s2257_s3 = inlined_call_operand.vmem [shape: f32[16,2], index: 3, kind: input, shape index: {}]   ;;  %s2258_s4 = inlined_call_operand.vmem [shape: f32[1,2], index: 4, kind: input, shape index: {}]   ;;  %s2259_s5 = inlined_call_operand.vmem [shape: f32[2,16], index: 5, kind: input, shape index: {}]   ;;  %s2260_s6 = inlined_call_operand.vmem [shape: f32[1,16], index: 6, kind: input, shape index: {}]   ;;  %s2261_s7 = inlined_call_operand.vmem [shape: f32[2,16,256], index: 7, kind: output, shape index: {}]  }
   0x1 LB: > { %s1599_s25 = sadd.s32 4294967295, %s1909_s24   ;;  %p1603_p0 = scmp.ge.s32.totalorder %s1909_s24, 1  ;;  %s1909_s24 = sphi %s1956_s24, %s17_s24  }
   0x2   : > { %p237_p1 = scmp.lt.s32.totalorder %s1909_s24, 3 }
   0x4   : > { %p238_p2 = pnand %p1603_p0, %p237_p1 }
   0x5   : > { %v1855_v0 = vld [vmem:[%s2255_s1 + $0x4c] ss:$8 sps:$4 sm:$0xff] (!%p238_p2)   ;;  %v1857_v1 = vld [vmem:[%s2255_s1 + $0x48] ss:$8 sps:$4 sm:$0xff] (!%p238_p2)   ;;  %v1911_v2 = vmov (!%p238_p2), 0   ;;  %p269_p3 = scmp.lt.s32.totalorder (!%p238_p2), %s1599_s25, 1  ;;  %v635_v4 = vlaneseq (!%p238_p2) }
   0x6   : > { %241 = sbr.rel (%p238_p2) target bundleno = 1195 (0x4ab), region = 48  ;;  %411 = vmatprep.mubr.bf16.mxu0 (!%p238_p2), %v1911_v2  ;;  %379 = vmatprep.subr.bf16.mxu0 (!%p238_p2), %v1855_v0  ;;  %v1858_v3 = vld [vmem:[%s2255_s1 + $0x5c] ss:$8 sps:$4 sm:$0xff] (!%p238_p2)   ;;  %v1860_v5 = vld [vmem:[%s2255_s1 + $0x58] ss:$8 sps:$4 sm:$0xff] (!%p238_p2)   ;;  %v1615_v10 = vld [vmem:[%s2255_s1 + $0x88] sm:$0xff] (!%p238_p2) }
   0x7   : > { %380 = vmatpush1.bf16.msra.mxu0 (!%p238_p2), %v1857_v1  ;;  %v1861_v6 = vld [vmem:[%s2255_s1 + $0x6c] ss:$8 sps:$4 sm:$0xff] (!%p238_p2)   ;;  %v1863_v7 = vld [vmem:[%s2255_s1 + $0x68] ss:$8 sps:$4 sm:$0xff] (!%p238_p2)   ;;  %v1864_v8 = vld [vmem:[%s2255_s1 + $0x7c] ss:$8 sps:$4 sm:$0xff] (!%p238_p2)   ;;  %v1627_v16 = vcombine.high (!%p238_p2), %v1615_v10, %v1615_v10  ;;  %v1626_v19 = vcombine.low (!%p238_p2), %v1615_v10, %v1615_v10 }
   0x8   : > { %381 = vmatprep.subr.bf16.mxu0 (!%p238_p2), %v1858_v3  ;;  %v1989_v9 = vshrl.u32 (!%p238_p2), %v635_v4, 7  ;;  %v1866_v15 = vld [vmem:[%s2255_s1 + $0x78] ss:$8 sps:$4 sm:$0xff] (!%p238_p2)   ;;  %v2009_v22 = vand.u32 (!%p238_p2), 127, %v635_v4  ;;  %vm372_vm0 = vcmask (!%p238_p2), 1043456   ;;  %vm368_vm4 = vcmask (!%p238_p2), 588800  }
   0x9   : > { %vm310_vm1 = vsmask.f32 (!%p238_p2), 7424  ;;  %v374_v26 = vsel (!%p238_p2), %vm372_vm0, %v1626_v19, 0  ;;  %v1871_v27 = vld [vmem:[%s2255_s1 + $0x4] ss:$8 sps:$4 sm:$0xff] (!%p238_p2)  }
   0xa   : > { %v684_v14 = vadd.s32 (!%p238_p2), 128, %v1989_v9  ;;  %v685_v21 = vadd.s32 (!%p238_p2), 136, %v1989_v9  ;;  %v2023_v30 = vadd.s32 (!%p238_p2), 8, %v1989_v9  ;;  %v704_v31 = vand.u32 (!%p238_p2), 15, %v1989_v9  ;;  %v1869_v33 = vld [vmem:[%s2255_s1] ss:$8 sps:$4 sm:$0xff] (!%p238_p2)  }
   0xb   : > { %382 = vmatpush1.bf16.msra.mxu0 (!%p238_p2), %v1860_v5  ;;  %v686_v32 = vadd.s32 (!%p238_p2), 144, %v1989_v9  ;;  %v687_v35 = vadd.s32 (!%p238_p2), 152, %v1989_v9  ;;  %v670_v36 = vadd.s32 (!%p238_p2), 16, %v1989_v9  ;;  %v1876_v37 = vld [vmem:[%s2255_s1 + $0x14] ss:$8 sps:$4 sm:$0xff] (!%p238_p2)   ;;  %v671_v42 = vadd.s32 (!%p238_p2), 24, %v1989_v9 }
   0xc   : > { %383 = vmatprep.subr.bf16.mxu0 (!%p238_p2), %v1861_v6  ;;  %v816_v23 = vand.u32 (!%p238_p2), 15, %v684_v14  ;;  %v823_v28 = vand.u32 (!%p238_p2), 15, %v685_v21  ;;  %v1912_v38 = vmov (!%p238_p2), 1.0|1.0   ;;  %v711_v39 = vand.u32 (!%p238_p2), 15, %v2023_v30  ;;  %v291_v56 = vld [vmem:[%s2255_s1 + $0x40] sm:$0xff] (!%p238_p2) }
   0xd   : > { %s2271_s25 = smov (!%p269_p3, %s1599_s25), 1  ;;  %vm2040_vm6 = vcmp.eq.s32.totalorder %v704_v31, %v2009_v22  ;;  %v830_v41 = vand.u32 15, %v686_v32  ;;  %v837_v43 = vand.u32 15, %v687_v35  ;;  %v718_v44 = vand.u32 15, %v670_v36  ;;  %v1874_v49 = vld [vmem:[%s2255_s1 + $0x10] ss:$8 sps:$4 sm:$0xff]  }
   0xe   : > { %s1841_s13 = smul.u32 12, %s2271_s25  ;;  %vm2017_vm2 = vcmp.eq.s32.totalorder %v816_v23, %v2009_v22  ;;  %vm1103_vm3 = vcmp.eq.s32.totalorder %v823_v28, %v2009_v22  ;;  %v688_v45 = vadd.s32 160, %v1989_v9  ;;  %vm1087_vm7 = vcmp.eq.s32.totalorder %v711_v39, %v2009_v22  ;;  %v1879_v52 = vld [vmem:[%s2255_s1 + $0x24] ss:$8 sps:$4 sm:$0xff]   ;;  %v1877_v54 = vld [vmem:[%s2255_s1 + $0x20] ss:$8 sps:$4 sm:$0xff]  }
   0xf   : > { %384 = vmatpush1.bf16.msra.mxu0 %v1863_v7  ;;  %vm1794_vm5 = vmpackc.low %vm1103_vm3, %vm2017_vm2  ;;  %vm2049_vm8 = vcmp.eq.s32.totalorder %v830_v41, %v2009_v22  ;;  %v725_v47 = vand.u32 15, %v671_v42  ;;  %v689_v48 = vadd.s32 168, %v1989_v9  ;;  %vm1105_vm10 = vcmp.eq.s32.totalorder %v837_v43, %v2009_v22  ;;  %v1882_v55 = vld [vmem:[%s2255_s1 + $0x34] ss:$8 sps:$4 sm:$0xff]   ;;  %v1880_v57 = vld [vmem:[%s2255_s1 + $0x30] ss:$8 sps:$4 sm:$0xff]  }
  0x10   : > { %s273_s22 = scalar_lea.vmem %s2254_s0, %s1841_s13  ;;  %385 = vmatprep.subr.bf16.mxu0 %v1864_v8  ;;  %1795 = vmatprep.subr.msk.bf16.mxu1 %vm1794_vm5, %v1912_v38  ;;  %vm1796_vm9 = vmpackc.low %vm1087_vm7, %vm2040_vm6  ;;  %vm2062_vm11 = vcmp.eq.s32.totalorder %v718_v44, %v2009_v22  ;;  %v844_v51 = vand.u32 15, %v688_v45  ;;  %v1639_v58 = vcombine.high %v291_v56, %v291_v56  ;;  %v1638_v59 = vcombine.low %v291_v56, %v291_v56  ;;  %v1887_v61 = vld [vmem:[%s2255_s1 + $0x94] ss:$8 sps:$4 sm:$0xff]   ;;  %v1885_v62 = vld [vmem:[%s2255_s1 + $0x90] ss:$8 sps:$4 sm:$0xff]   ;;  %s1741_s10 = sshll.u32 %s2271_s25, 5 }
  0x11   : > { %v1997_v11 = vld [vmem:[%s273_s22] sm:$0xff]   ;;  %v1999_v12 = vld [vmem:[%s273_s22 + $0x8] ss:$0 sps:$4 sm:$0x11]   ;;  %1797 = vmatpush3.bf16.msk.msra.mxu1 %vm1796_vm9, %v1912_v38  ;;  %vm1798_vm12 = vmpackc.low %vm1105_vm10, %vm2049_vm8  ;;  %vm1089_vm13 = vcmp.eq.s32.totalorder %v725_v47, %v2009_v22  ;;  %v851_v53 = vand.u32 15, %v689_v48  ;;  %vm528_vm3 = vcmask 1046528   ;;  %s278_s13 = scalar_lea.vmem %s2261_s7, %s1741_s10 }
  0x12   : > { %v314_v13 = vshll.u32 %v1997_v11, 16  ;;  %v312_v17 = vshrl.u32 %v1997_v11, 16  ;;  %v319_v18 = vshll.u32 %v1999_v12, 16  ;;  %1799 = vmatprep.subr.msk.bf16.mxu1 %vm1798_vm12, %v1912_v38  ;;  %vm1800_vm14 = vmpackc.low %vm1089_vm13, %vm2062_vm11  ;;  %vm1106_vm15 = vcmp.eq.s32.totalorder %v844_v51, %v2009_v22  ;;  %v1890_v63 = vld [vmem:[%s2255_s1 + $0xa4] ss:$8 sps:$4 sm:$0xff]   ;;  %v1650_v5 = vld [vmem:[%s2255_s1 + $0xd0] sm:$0xff] }
  0x13   : > { %386 = vmatpush1.bf16.msra.mxu0 %v1866_v15  ;;  %v470_v60 = vsel %vm372_vm0, %v1638_v59, 0  ;;  %v1888_v0 = vld [vmem:[%s2255_s1 + $0xa0] ss:$8 sps:$4 sm:$0xff]   ;;  %v1893_v1 = vld [vmem:[%s2255_s1 + $0xb4] ss:$8 sps:$4 sm:$0xff]   ;;  %v1660_v6 = vcombine.high %v1650_v5, %v1650_v5  ;;  %v1659_v7 = vcombine.low %v1650_v5, %v1650_v5  ;;  %v529_v8 = vrot.slane %v1997_v11, 1 }
  0x14   : > { %v316_v20 = vrot.slane %v314_v13, 1  ;;  %v321_v25 = vrot.slane %v319_v18, 1  ;;  %1628 = vmatprep.subr.msk.bf16.mxu0 %vm372_vm0, %v1627_v16  ;;  %v1891_v3 = vld [vmem:[%s2255_s1 + $0xb0] ss:$8 sps:$4 sm:$0xff]   ;;  %v1896_v4 = vld [vmem:[%s2255_s1 + $0xc4] ss:$8 sps:$4 sm:$0xff]  }
  0x15   : > { %1801 = vmatpush3.bf16.msk.msra.mxu1 %vm1800_vm14, %v1912_v38  ;;  %v530_v10 = vrot.slane %v1999_v12, 1  ;;  %v581_v13 = vsel %vm372_vm0, %v1659_v7, 0  ;;  %v672_v15 = vadd.s32 32, %v1989_v9  ;;  %v673_v16 = vadd.s32 40, %v1989_v9 }
  0x16   : > { %v317_v24 = vor.u32 %v316_v20, %v312_v17  ;;  %v690_v19 = vadd.s32 176, %v1989_v9  ;;  %v674_v12 = vadd.s32 48, %v1989_v9  ;;  %v675_v23 = vadd.s32 56, %v1989_v9 }
  0x17   : > { %388 = vmatpush1.bf16.msra.mxu0 %v374_v26  ;;  %v531_v14 = vsel %vm528_vm3, %v529_v8, %v530_v10  ;;  %v732_v17 = vand.u32 15, %v672_v15  ;;  %v739_v18 = vand.u32 15, %v673_v16  ;;  %v692_v26 = vadd.s32 192, %v1989_v9 }
  0x18   : > { %v322_v34 = vsel %vm310_vm1, %v317_v24, %v321_v25  ;;  %475 = vmatprep.subr.bf16.mxu0 %v1871_v27  ;;  %vm1107_vm1 = vcmp.eq.s32.totalorder %v851_v53, %v2009_v22  ;;  %v858_v20 = vand.u32 15, %v690_v19  ;;  %v746_v24 = vand.u32 15, %v674_v12 }
  0x19   : > { %vm1802_vm2 = vmpackc.low %vm1107_vm1, %vm1106_vm15  ;;  %vm1090_vm5 = vcmp.eq.s32.totalorder %v732_v17, %v2009_v22  ;;  %vm1091_vm6 = vcmp.eq.s32.totalorder %v739_v18, %v2009_v22  ;;  %v753_v25 = vand.u32 15, %v675_v23  ;;  %v693_v27 = vadd.s32 200, %v1989_v9 }
  0x1a   : > { %1629 = vmatmul.mubr.msk.bf16.vlgmr.msra.gmra.mrb[0].mxu0 %vm368_vm4, %v322_v34  ;;  %1803 = vmatprep.subr.msk.bf16.mxu1 %vm1802_vm2, %v1912_v38  ;;  %vm1092_vm9 = vcmp.eq.s32.totalorder %v746_v24, %v2009_v22  ;;  %v676_v28 = vadd.s32 64, %v1989_v9  ;;  %v677_v29 = vadd.s32 72, %v1989_v9  ;;  %v872_v31 = vand.u32 15, %v692_v26 }
  0x1b   : > { %476 = vmatpush1.bf16.msra.mxu0 %v1869_v33  ;;  %507 = vmatprep.mubr.bf16.mxu0 %v1911_v2  ;;  %vm1093_vm10 = vcmp.eq.s32.totalorder %v753_v25, %v2009_v22  ;;  %v879_v32 = vand.u32 15, %v693_v27  ;;  %v694_v35 = vadd.s32 208, %v1989_v9  ;;  %v695_v36 = vadd.s32 216, %v1989_v9 }
  0x1c   : > { %477 = vmatprep.subr.bf16.mxu0 %v1876_v37  ;;  %vm1808_vm11 = vmpackc.low %vm1093_vm10, %vm1092_vm9  ;;  %v760_v33 = vand.u32 15, %v676_v28  ;;  %v767_v34 = vand.u32 15, %v677_v29  ;;  %vm1110_vm12 = vcmp.eq.s32.totalorder %v872_v31, %v2009_v22  ;;  %v678_v37 = vadd.s32 80, %v1989_v9  ;;  %v1253_v29 = vld [vmem:[%s2257_s3] sm:$0xff]  ;;  %v1254_v31 = vld [vmem:[%s2257_s3 + $0x8] sm:$0xff] }
  0x1d   : > { %vm1111_vm13 = vcmp.eq.s32.totalorder %v879_v32, %v2009_v22  ;;  %v886_v39 = vand.u32 15, %v694_v35  ;;  %v893_v40 = vand.u32 15, %v695_v36  ;;  %v679_v41 = vadd.s32 88, %v1989_v9 }
  0x1e   : > { %vm1094_vm14 = vcmp.eq.s32.totalorder %v760_v33, %v2009_v22  ;;  %vm1095_vm15 = vcmp.eq.s32.totalorder %v767_v34, %v2009_v22  ;;  %vm1810_vm1 = vmpackc.low %vm1111_vm13, %vm1110_vm12  ;;  %v774_v42 = vand.u32 15, %v678_v37  ;;  %v696_v44 = vadd.s32 224, %v1989_v9 }
  0x1f   : > { %478 = vmatpush1.bf16.msra.mxu0 %v1874_v49  ;;  %vm1812_vm2 = vmpackc.low %vm1095_vm15, %vm1094_vm14  ;;  %vm1112_vm3 = vcmp.eq.s32.totalorder %v886_v39, %v2009_v22  ;;  %v781_v43 = vand.u32 15, %v679_v41  ;;  %v697_v45 = vadd.s32 232, %v1989_v9  ;;  %v680_v46 = vadd.s32 96, %v1989_v9  ;;  %v1255_v41 = vld [vmem:[%s2258_s4] sm:$0x1] }
  0x20   : > { %479 = vmatprep.subr.bf16.mxu0 %v1879_v52  ;;  %v681_v47 = vadd.s32 104, %v1989_v9  ;;  %v900_v48 = vand.u32 15, %v696_v44  ;;  %v698_v52 = vadd.s32 240, %v1989_v9  ;;  %v699_v53 = vadd.s32 248, %v1989_v9 }
  0x21   : > { %v907_v49 = vand.u32 15, %v697_v45  ;;  %v788_v50 = vand.u32 15, %v680_v46  ;;  %v1827_v32 = vpack.c.bf16 %v1254_v31, %v1253_v29  ;;  %v1913_v33 = vmov 0.0|0.0  }
  0x22   : > { %v795_v51 = vand.u32 15, %v681_v47  ;;  %v914_v56 = vand.u32 15, %v698_v52  ;;  %v1915_v34 = vmov 0.0   ;;  %v1417_v46 = vadd.s32 128, %v2009_v22 }
  0x23   : > { %480 = vmatpush1.bf16.msra.mxu0 %v1877_v54  ;;  %v682_v54 = vadd.s32 112, %v1989_v9  ;;  %vm1115_vm9 = vcmp.eq.s32.totalorder %v907_v49, %v2009_v22  ;;  %vm1098_vm10 = vcmp.eq.s32.totalorder %v788_v50, %v2009_v22  ;;  %v1422_v47 = vand.u32 15, %v2009_v22 }
  0x24   : > { %481 = vmatprep.subr.bf16.mxu0 %v1882_v55  ;;  %v683_v55 = vadd.s32 120, %v1989_v9  ;;  %vm1116_vm14 = vcmp.eq.s32.totalorder %v914_v56, %v2009_v22 }
  0x26   : > { %v809_v59 = vand.u32 15, %v683_v55 }
  0x27   : > { %482 = vmatpush1.bf16.msra.mxu0 %v1880_v57  ;;  %v921_v57 = vand.u32 15, %v699_v53 }
  0x28   : > { %1640 = vmatprep.subr.msk.bf16.mxu0 %vm372_vm0, %v1639_v58  ;;  %v802_v58 = vand.u32 15, %v682_v54 }
  0x29   : > { %vm1117_vm15 = vcmp.eq.s32.totalorder %v921_v57, %v2009_v22 }
  0x2b   : > { %484 = vmatpush1.bf16.msra.mxu0 %v470_v60  ;;  %v2185_v60 = vsub.s32 0, %v1989_v9 }
  0x2c   : > { %586 = vmatprep.subr.bf16.mxu0 %v1887_v61  ;;  %v633_v61 = vld [vmem:[%s2256_s2] sm:$0x3] }
  0x2e   : > { %1641 = vmatmul.mubr.msk.bf16.vlgmr.msra.gmra.mrb[0].mxu0 %vm368_vm4, %v1997_v11  ;;  %v691_v11 = vadd.s32 184, %v1989_v9 }
  0x2f   : > { %587 = vmatpush1.bf16.msra.mxu0 %v1885_v62  ;;  %618 = vmatprep.mubr.bf16.mxu0 %v1911_v2  ;;  %v1894_v2 = vld [vmem:[%s2255_s1 + $0xc0] ss:$8 sps:$4 sm:$0xff]   ;;  %v641_v62 = vsub.s32 1, %v1989_v9 }
  0x30   : > { %588 = vmatprep.subr.bf16.mxu0 %v1890_v63  ;;  %v865_v21 = vand.u32 15, %v691_v11  ;;  %v638_v63 = vrot.slane %v633_v61, %v2185_v60 }
  0x32   : > { %vm1109_vm7 = vcmp.eq.s32.totalorder %v865_v21, %v2009_v22 }
  0x33   : > { %589 = vmatpush1.bf16.msra.mxu0 %v1888_v0  ;;  %v642_v0 = vrot.slane %v633_v61, %v641_v62 }
  0x34   : > { %590 = vmatprep.subr.bf16.mxu0 %v1893_v1 }
  0x37   : > { %591 = vmatpush1.bf16.msra.mxu0 %v1891_v3 }
  0x38   : > { %592 = vmatprep.subr.bf16.mxu0 %v1896_v4 }
  0x3b   : > { %593 = vmatpush1.bf16.msra.mxu0 %v1894_v2 }
  0x3c   : > { %1661 = vmatprep.subr.msk.bf16.mxu0 %vm372_vm0, %v1660_v6  ;;  %vm1804_vm0 = vmpackc.low %vm1091_vm6, %vm1090_vm5  ;;  %vm1113_vm5 = vcmp.eq.s32.totalorder %v893_v40, %v2009_v22  ;;  %v1331_v40 = vld [vmem:[%s2259_s5] sm:$0x3] }
  0x3d   : > { %1805 = vmatpush3.bf16.msk.msra.mxu1 %vm1804_vm0, %v1912_v38  ;;  %vm1814_vm6 = vmpackc.low %vm1113_vm5, %vm1112_vm3  ;;  %vm1096_vm0 = vcmp.eq.s32.totalorder %v774_v42, %v2009_v22  ;;  %vm1101_vm3 = vcmp.eq.s32.totalorder %v809_v59, %v2009_v22 }
  0x3f   : > { %595 = vmatpush1.bf16.msra.mxu0 %v581_v13 }
  0x42   : > { %1662 = vmatmul.mubr.msk.bf16.vlgmr.msra.gmra.mrb[0].mxu0 %vm368_vm4, %v531_v14  ;;  %vm1108_vm4 = vcmp.eq.s32.totalorder %v858_v20, %v2009_v22 }
  0x43   : > { %vm1806_vm8 = vmpackc.low %vm1109_vm7, %vm1108_vm4  ;;  %vm1097_vm4 = vcmp.eq.s32.totalorder %v781_v43, %v2009_v22 }
  0x44   : > { %1807 = vmatprep.subr.msk.bf16.mxu1 %vm1806_vm8, %v1912_v38  ;;  %vm1816_vm7 = vmpackc.low %vm1097_vm4, %vm1096_vm0  ;;  %vm1114_vm8 = vcmp.eq.s32.totalorder %v900_v48, %v2009_v22  ;;  %vm1256_vm0 = vcmask 130048   ;;  %vm1337_vm4 = vcmask 1041408   ;;  %v1429_v48 = vand.u32 15, %v1417_v46 }
  0x45   : > { %1809 = vmatpush3.bf16.msk.msra.mxu1 %vm1808_vm11, %v1912_v38  ;;  %vm1099_vm11 = vcmp.eq.s32.totalorder %v795_v51, %v2009_v22  ;;  %vm1818_vm12 = vmpackc.low %vm1115_vm9, %vm1114_vm8  ;;  %vm1442_vm8 = vcmp.eq.s32.totalorder %v1989_v9, %v1422_v47  ;;  %vm1444_vm9 = vcmp.eq.s32.totalorder %v2023_v30, %v1422_v47 }
  0x46   : > { %1811 = vmatprep.subr.msk.bf16.mxu1 %vm1810_vm1, %v1912_v38  ;;  %vm1820_vm13 = vmpackc.low %vm1099_vm11, %vm1098_vm10  ;;  %vm1100_vm1 = vcmp.eq.s32.totalorder %v802_v58, %v2009_v22  ;;  %vm1443_vm10 = vcmp.eq.s32.totalorder %v1989_v9, %v1429_v48  ;;  %vm1445_vm11 = vcmp.eq.s32.totalorder %v2023_v30, %v1429_v48  ;;  %v1332_v22 = vld [vmem:[%s2260_s6] sm:$0x1] }
  0x47   : > { %vm1824_vm5 = vmpackc.low %vm1101_vm3, %vm1100_vm1 }
  0x49   : > { %1813 = vmatpush3.bf16.msk.msra.mxu1 %vm1812_vm2, %v1912_v38  ;;  %vm1822_vm2 = vmpackc.low %vm1117_vm15, %vm1116_vm14 }
  0x4a   : > { %1815 = vmatprep.subr.msk.bf16.mxu1 %vm1814_vm6, %v1912_v38  ;;  %vm1914_vm6 = vmmov 0  }
  0x4d   : > { %1817 = vmatpush3.bf16.msk.msra.mxu1 %vm1816_vm7, %v1912_v38  ;;  %vm1333_vm7 = vcmask 15360  }
  0x4e   : > { %1819 = vmatprep.subr.msk.bf16.mxu1 %vm1818_vm12, %v1912_v38  ;;  %vm1831_vm12 = vmpackc.low %vm1444_vm9, %vm1442_vm8 }
  0x51   : > { %1821 = vmatpush3.bf16.msk.msra.mxu1 %vm1820_vm13, %v1912_v38  ;;  %vm1829_vm13 = vmpackc.low %vm1445_vm11, %vm1443_vm10 }
  0x52   : > { %1823 = vmatprep.subr.msk.bf16.mxu1 %vm1822_vm2, %v1912_v38 }
  0x55   : > { %1825 = vmatpush3.bf16.msk.msra.mxu1 %vm1824_vm5, %v1912_v38 }
  0x56   : > { %1826 = vmatprep.subr.bf16.mxu1 %v1913_v33 }
 0x115   : > { %v620_v1 = vpop.f32.mrb[0].mxu0 }
 0x116   : > { %v2192_v3 = vadd.f32 %v638_v63, %v620_v1  ;;  %v622_v4 = vpop.f32.mrb[1].mxu0 }
 0x117   : > { %v2194_v5 = vadd.f32 %v642_v0, %v622_v4  ;;  %v624_v2 = vpop.f32.mrb[2].mxu0 }
 0x118   : > { %v2196_v6 = vadd.f32 %v638_v63, %v624_v2  ;;  %v626_v7 = vpop.f32.mrb[3].mxu0  ;;  %v649_v10 = vmax.f32 %v2192_v3, 0.0 }
 0x119   : > { %v2198_v8 = vadd.f32 %v642_v0, %v626_v7  ;;  %v650_v14 = vmax.f32 %v2194_v5, 0.0 }
 0x11a   : > { %v651_v13 = vmax.f32 %v2196_v6, 0.0 }
 0x11b   : > { %v652_v15 = vmax.f32 %v2198_v8, 0.0 }
 0x11c   : > { %v653_v16 = vadd.f32 %v651_v13, %v649_v10 }
 0x11d   : > { %v660_v17 = vadd.f32 %v652_v15, %v650_v14 }
 0x11e   : > { %v654_v18 = vrot.slane %v653_v16, 4 }
 0x11f   : > { %v661_v19 = vrot.slane %v660_v17, 4 }
 0x120   : > { %v655_v11 = vadd.f32 %v654_v18, %v653_v16 }
 0x121   : > { %v662_v12 = vadd.f32 %v661_v19, %v660_v17 }
 0x122   : > { %v656_v20 = vrot.slane %v655_v11, 2 }
 0x123   : > { %v663_v21 = vrot.slane %v662_v12, 2 }
 0x124   : > { %v657_v23 = vadd.f32 %v656_v20, %v655_v11 }
 0x125   : > { %v664_v24 = vadd.f32 %v663_v21, %v662_v12 }
 0x126   : > { %v658_v25 = vrot.slane %v657_v23, 1 }
 0x127   : > { %v665_v26 = vrot.slane %v664_v24, 1 }
 0x128   : > { %v659_v28 = vadd.f32 %v658_v25, %v657_v23 }
 0x129   : > { %v666_v27 = vadd.f32 %v665_v26, %v664_v24 }
 0x12b   : > { %1246 = vmatprep.mubr.f32.mxu1 %v666_v27 }
 0x12c   : > { %1247 = vmatmul.mubr.f32.vlgmr.msra.gmra.mrb[0].mxu1 %v659_v28 }
 0x12d   : > { %1828 = vmatpush3.bf16.msra.mxu1 %v1827_v32  ;;  %1786 = vmatprep.mubr.msk.f32.mxu1 %vm1914_vm6, %v1915_v34 }
 0x12e   : > { %1789 = vmatprep.subr.mxu1 %v1915_v34 }
 0x1ff   : > { %v1774_v35 = vpop.f32.mrb[0].mxu1 }
 0x200   : > { %v1775_v36 = vpop.f32.mrb[1].mxu1 }
 0x201   : > { %v1776_v37 = vadd.f32 %v1775_v36, %v1774_v35 }
 0x203   : > { %v1252_v39 = vmul.f32 0.00390625, %v1776_v37 }
 0x205   : > { %1787 = vmatmul.mubr.msk.f32.vlgmr.msra.gmra.mrb[2].mxu1 %vm1256_vm0, %v1252_v39 }
 0x206   : > { %1791 = vmatprep.mubr.msk.f32.mxu1 %vm1914_vm6, %v1915_v34  ;;  %1790 = vmatpush3.msk.msra.mxu1 %vm1337_vm4, %v1331_v40 }
 0x207   : > { %1830 = vmatprep.subr.msk.bf16.mxu1 %vm1829_vm13, %v1912_v38 }
 0x2d8   : > { %v1326_v42 = vpop.f32.mrb[2].mxu1 }
 0x2d9   : > { %v1327_v43 = vadd.f32 %v1326_v42, %v1255_v41  ;;  %v1788_v44 = vpop.f32.mrb[3].mxu1 }
 0x2db   : > { %v1330_v45 = vmax.f32 %v1327_v43, 0.0 }
 0x2dd   : > { %1792 = vmatmul.mubr.msk.f32.vlgmr.msra.gmra.mrb[4].mxu1 %vm1333_vm7, %v1330_v45 }
 0x2de   : > { %1521 = vmatprep.mubr.f32.mxu1 %v1915_v34  ;;  %1832 = vmatpush1.bf16.msk.msra.mxu1 %vm1831_vm12, %v1912_v38 }
 0x3b0   : > { %v1407_v49 = vpop.f32.mrb[4].mxu1 }
 0x3b1   : > { %v1408_v50 = vadd.f32 %v1407_v49, %v1332_v22  ;;  %v1793_v51 = vpop.f32.mrb[5].mxu1 }
 0x3b3   : > { %v1411_v52 = vsub.f32 0.0, %v1408_v50 }
 0x3b5   : > { %v1412_v53 = vmul.f32 1.442695, %v1411_v52 }
 0x3b7   : > { %1899 = vpow2.f32 %v1412_v53 }
 0x3c1   : > { %v1900_v9 = vpop.eup %1899 }
 0x3c2   : > { %v1414_v54 = vadd.f32 1.0, %v1900_v9 }
 0x3c4   : > { %1901 = vrcp.f32 %v1414_v54 }
 0x3ce   : > { %v1902_v30 = vpop.eup %1901 }
 0x3cf   : > { %1738 = vmatmul.mubr.msk.f32.vlgmr.msra.gmra.mrb[6].mxu1 %vm1256_vm0, %v1902_v30 }
 0x4a2   : > { %v1523_v55 = vpop.f32.mrb[6].mxu1 }
 0x4a3   : > { %v1524_v56 = vadd.f32 1.0, %v1523_v55  ;;  %v1525_v38 = vpop.f32.mrb[7].mxu1 }
 0x4a4   : > { %v1526_v57 = vadd.f32 1.0, %v1525_v38 }
 0x4a5   : > { %v1531_v58 = vrot.slane %v1524_v56, %v2185_v60 }
 0x4a6   : > { %v1535_v59 = vrot.slane %v1526_v57, %v2185_v60 }
 0x4a7   : > { %v1536_v61 = vmul.f32 %v1531_v58, %v649_v10  ;;  %v1538_v62 = vmul.f32 %v1531_v58, %v651_v13 }
 0x4a8   : > { %v1537_v63 = vmul.f32 %v1535_v59, %v650_v14  ;;  %v1539_v0 = vmul.f32 %v1535_v59, %v652_v15 }
 0x4a9   : > { %1540 = vst [vmem:[%s278_s13] sm:$0xff] %v1536_v61  ;;  %1542 = vst [vmem:[%s278_s13 + $0x10] sm:$0xff] %v1538_v62 }
 0x4aa   : > { %1541 = vst [vmem:[%s278_s13 + $0x8] sm:$0xff] %v1537_v63  ;;  %1543 = vst [vmem:[%s278_s13 + $0x18] sm:$0xff] %v1539_v0 }
 0x4ab PF: > { %s17_s24 = sadd.s32 1, %s1909_s24  }
 0x4ac   : > { %p14_p4 = scmp.ge.s32.totalorder %s17_s24, 4  }
 0x4ae   :  { %16 = sbr.rel (!%p14_p4) target bundleno = 1 (0x1), region = 80 }

</bundles_post_ra>
